<compile_context>
chip_gen: v5e
topology: v5e:2x2
jax: 0.10.0
libtpu: 0.0.40
codegen_flags: <defaults>
</compile_context>

<pallas_src>
import functools

import jax
import jax.numpy as jnp
from jax.experimental import pallas as pl
from jax.experimental.pallas import tpu as pltpu


def _vmem_capacity_bytes():
    """Trace-time VMEM capacity query; conservative (v7x) fallback."""
    try:
        info = pltpu.get_tpu_info()
        cap = getattr(info, "vmem_capacity_bytes", None)
        if cap:
            return int(cap)
    except Exception:
        pass
    return 64 * 1024 * 1024


def _masked_sqerr_kernel(*refs, n_rows, block_rows, rows_per_shard,
                         use_mask, needs_row_mask):
    """Grid = (shards ['parallel'], lane_blocks ['arbitrary'], row_blocks ['arbitrary'])."""
    if use_mask:
        mask_ref, yp_ref, yt_ref, o_ref, acc_ref, part_ref = refs
    else:
        yp_ref, yt_ref, o_ref, acc_ref, part_ref = refs
        mask_ref = None

    s = pl.program_id(0)
    j = pl.program_id(1)
    i = pl.program_id(2)
    last_j = pl.num_programs(1) - 1
    last_i = pl.num_programs(2) - 1

    # Per-shard scalar partial (SMEM scratch persists across grid steps).
    @pl.when((j == 0) & (i == 0))
    def _():
        part_ref[0] = 0.0

    # Per lane-block vector accumulator.
    @pl.when(i == 0)
    def _():
        acc_ref[...] = jnp.zeros_like(acc_ref)

    # Logical row offset of this block (may exceed n_rows for tail/dup blocks).
    row_start = (s * rows_per_shard + i) * block_rows

    def accumulate(masked):
        yp = yp_ref[...].astype(jnp.float32)          # (T, LW)
        yt = yt_ref[...].astype(jnp.float32)
        d = yp - yt
        sq = d * d
        if masked:
            rid = jax.lax.broadcasted_iota(jnp.int32, sq.shape, 0) + row_start
            sq = jnp.where(rid < n_rows, sq, 0.0)     # select: OOB garbage never propagates
        acc_ref[...] += jnp.sum(sq, axis=0, keepdims=True)

    if needs_row_mask:
        is_full = row_start + block_rows <= n_rows

        @pl.when(is_full)
        def _():
            accumulate(masked=False)                  # fast path: no per-step masking

        @pl.when(jnp.logical_not(is_full))
        def _():
            accumulate(masked=True)                   # tail / duplicate block only
    else:
        accumulate(masked=False)

    # Lane-block finalize: apply the border mask ONCE, reduce to a scalar.
    @pl.when(i == last_i)
    def _():
        a = acc_ref[...]
        if use_mask:
            a = a * mask_ref[...]                     # (1, LW) * (1, LW)
        part_ref[0] += jnp.sum(a)

    # Shard finalize: write the per-shard partial sum to SMEM output.
    @pl.when((j == last_j) & (i == last_i))
    def _():
        o_ref[0, 0] = part_ref[0]


def loss_masked_border(ypred, ytrue, border):
    """Equivalent of LossMaskedBorder(nn.MSELoss(), border)(ypred, ytrue)."""
    assert ypred.shape == ytrue.shape
    B, C, H, W = ypred.shape
    bh, bw = int(border[0]), int(border[1])
    assert 2 * bh < H and 2 * bw < W, "border too large for spatial dims"

    N = B * C
    HW = H * W
    count = N * (H - 2 * bh) * (W - 2 * bw)
    itemsize = int(jnp.dtype(ypred.dtype).itemsize)
    sub = {4: 8, 2: 16, 1: 32}.get(itemsize, 8)       # sublane multiple per dtype

    # ---- per-generation VMEM budget (explicit limit, generation-aware blocks) ----
    vmem_cap = _vmem_capacity_bytes()
    if vmem_cap <= 64 * 1024 * 1024:                  # v7x: 64 MiB per TC
        vmem_limit = 48 * 1024 * 1024
        target_block_bytes = 4 * 1024 * 1024
    else:                                             # v5e / v6e: 128 MiB
        vmem_limit = 64 * 1024 * 1024
        target_block_bytes = 8 * 1024 * 1024

    # ---- lane (last-dim) tile: only needed for huge images; multiples of 128 ----
    if HW % 128 == 0 and sub * HW * itemsize > target_block_bytes:
        lanes_budget = target_block_bytes // (sub * itemsize)
        n128 = HW // 128
        d_best = 1
        for d in range(1, n128 + 1):                  # host-side; largest divisor fitting budget
            if n128 % d == 0 and d * 128 <= lanes_budget:
                d_best = d
        LW = d_best * 128
    else:
        LW = HW                                       # full last dim (always legal)
    lane_steps = HW // LW

    # ---- row tile: multiple of the sublane factor, sized to the budget ----
    row_bytes = LW * itemsize
    cap_rows = max(sub, (target_block_bytes // row_bytes) // sub * sub)
    if N < sub:
        T = N                                         # full-dim block
    else:
        T = min((N // sub) * sub, cap_rows)
    total_row_blocks = pl.cdiv(N, T)

    # Two shards only when there are >=2 row blocks; splits REAL blocks ~evenly.
    num_shards = 2 if total_row_blocks >= 2 else 1
    rows_per_shard = pl.cdiv(total_row_blocks, num_shards)
    needs_row_mask = num_shards * rows_per_shard * T > N
    has_dup_blocks = num_shards * rows_per_shard > total_row_blocks

    # Lane-dense layout (metadata-only reshape, no HBM copy).
    yp = ypred.reshape(N, HW)
    yt = ytrue.reshape(N, HW)

    use_mask = (bh != 0) or (bw != 0)

    kernel = functools.partial(
        _masked_sqerr_kernel,
        n_rows=N, block_rows=T, rows_per_shard=rows_per_shard,
        use_mask=use_mask, needs_row_mask=needs_row_mask)

    def row_block(s, j, i):
        b = s * rows_per_shard + i
        if has_dup_blocks:
            b = jnp.minimum(b, total_row_blocks - 1)  # keep DMA in bounds; row mask zeroes it
        return (b, j)

    in_specs = []
    args = []
    if use_mask:
        rows = jnp.arange(H, dtype=jnp.int32)[:, None]
        cols = jnp.arange(W, dtype=jnp.int32)[None, :]
        m = jnp.ones((H, W), dtype=jnp.bool_)
        if bh != 0:
            m = m & (rows >= bh) & (rows < H - bh)
        if bw != 0:
            m = m & (cols >= bw) & (cols < W - bw)
        mask = m.astype(jnp.float32).reshape(1, HW)
        in_specs.append(pl.BlockSpec((1, LW), lambda s, j, i: (0, j)))  # resident per lane block
        args.append(mask)
    in_specs += [pl.BlockSpec((T, LW), row_block),    # ypred rows
                 pl.BlockSpec((T, LW), row_block)]    # ytrue rows
    args += [yp, yt]

    partials = pl.pallas_call(
        kernel,
        out_shape=jax.ShapeDtypeStruct((num_shards, 1), jnp.float32),
        grid_spec=pltpu.PrefetchScalarGridSpec(
            num_scalar_prefetch=0,
            grid=(num_shards, lane_steps, rows_per_shard),
            in_specs=in_specs,
            out_specs=pl.BlockSpec(
                (1, 1), lambda s, j, i: (s, 0), memory_space=pltpu.MemorySpace.SMEM),
            scratch_shapes=[pltpu.VMEM((1, LW), jnp.float32),   # per lane-block accumulator
                            pltpu.SMEM((1,), jnp.float32)],     # per-shard scalar partial
        ),
        compiler_params=pltpu.CompilerParams(
            dimension_semantics=("parallel", "arbitrary", "arbitrary"),
            vmem_limit_bytes=int(vmem_limit),
        ),
        cost_estimate=pl.CostEstimate(
            flops=3 * N * HW,
            transcendentals=0,
            bytes_accessed=2 * N * HW * itemsize + 4 * num_shards,
        ),
    )(*args)

    # Combine per-shard partials and normalize outside the kernel.
    return jnp.sum(partials) / jnp.float32(count)


def _reference(ypred, ytrue, border):
    bh, bw = border
    yp, yt = ypred, ytrue
    if bh != 0:
        yp = yp[..., bh:-bh, :]
        yt = yt[..., bh:-bh, :]
    if bw != 0:
        yp = yp[..., bw:-bw]
        yt = yt[..., bw:-bw]
    return jnp.mean((yp.astype(jnp.float32) - yt.astype(jnp.float32)) ** 2)


if __name__ == "__main__":
    key = jax.random.PRNGKey(0)
    k1, k2, k3, k4 = jax.random.split(key, 4)

    # Primary test: matches the module's typical use (border crop + MSE mean).
    B, C, H, W = 2, 4, 16, 16
    border = (2, 3)
    ypred = jax.random.uniform(k1, (B, C, H, W), dtype=jnp.float32)
    ytrue = (jax.random.uniform(k2, (B, C, H, W), dtype=jnp.float32) > 0.5).astype(
        jnp.float32
    )
    out = loss_masked_border(ypred, ytrue, border)
    out = jax.block_until_ready(out)
    ref = _reference(ypred, ytrue, border)
    assert jnp.allclose(out, ref, rtol=2e-5, atol=1e-6), (out, ref)

    # Secondary test: border == (0, 0) path (no mask operand), ragged row tail
    # and two-shard split without any host-side padding.
    B2, C2 = 5, 4   # N = 20 rows, not a multiple of the 16-row tile
    yp2 = jax.random.uniform(k3, (B2, C2, H, W), dtype=jnp.float32)
    yt2 = jax.random.uniform(k4, (B2, C2, H, W), dtype=jnp.float32)
    out2 = loss_masked_border(yp2, yt2, (0, 0))
    out2 = jax.block_until_ready(out2)
    ref2 = _reference(yp2, yt2, (0, 0))
    assert jnp.allclose(out2, ref2, rtol=2e-5, atol=1e-6), (out2, ref2)

    print("KERNEL_OK")
</pallas_src>

<mosaic_0001>
module attributes {stable_mosaic.version = 11 : i64} {
  func.func @_masked_sqerr_kernel(%arg0: i32, %arg1: i32, %arg2: i32, %arg3: memref<1x256xf32, #tpu.memory_space<vmem>>, %arg4: memref<8x256xf32, #tpu.memory_space<vmem>>, %arg5: memref<8x256xf32, #tpu.memory_space<vmem>>, %arg6: memref<1x1xf32, #tpu.memory_space<smem>>, %arg7: memref<1x256xf32, #tpu.memory_space<vmem>>, %arg8: memref<1xf32, #tpu.memory_space<smem>>) attributes {dimension_semantics = [#tpu.dimension_semantics<parallel>, #tpu.dimension_semantics<arbitrary>, #tpu.dimension_semantics<arbitrary>], iteration_bounds = array<i64: 1, 1, 1>, scalar_prefetch = 0 : i64, scratch_operands = 2 : i64, tpu.core_type = #tpu.core_type<tc>, window_params = [{transform_indices = @transform_0, window_bounds = array<i64: 1, 256>}, {transform_indices = @transform_1, window_bounds = array<i64: 8, 256>}, {transform_indices = @transform_2, window_bounds = array<i64: 8, 256>}, {transform_indices = @transform_3, window_bounds = array<i64: 1, 1>}]} {
    %c0_i32 = arith.constant 0 : i32
    %0 = arith.cmpi eq, %arg1, %c0_i32 : i32
    %c0_i32_0 = arith.constant 0 : i32
    %1 = arith.cmpi eq, %arg2, %c0_i32_0 : i32
    %2 = arith.andi %0, %1 : i1
    %3 = arith.extui %2 : i1 to i32
    %c0_i32_1 = arith.constant 0 : i32
    %4 = arith.cmpi ne, %3, %c0_i32_1 : i32
    scf.if %4 {
      %cst_16 = arith.constant 0.000000e+00 : f32
      %c0_17 = arith.constant 0 : index
      %25 = memref.load %arg8[%c0_17] : memref<1xf32, #tpu.memory_space<smem>>
      memref.store %cst_16, %arg8[%c0_17] : memref<1xf32, #tpu.memory_space<smem>>
    } else {
    }
    %c0_i32_2 = arith.constant 0 : i32
    %5 = arith.cmpi eq, %arg2, %c0_i32_2 : i32
    %6 = arith.extui %5 : i1 to i32
    %c0_i32_3 = arith.constant 0 : i32
    %7 = arith.cmpi ne, %6, %c0_i32_3 : i32
    scf.if %7 {
      %cst_16 = arith.constant 0.000000e+00 : f32
      %25 = vector.broadcast %cst_16 : f32 to vector<1x256xf32>
      %c0_17 = arith.constant 0 : index
      %c0_18 = arith.constant 0 : index
      %26 = vector.load %arg7[%c0_17, %c0_18] : memref<1x256xf32, #tpu.memory_space<vmem>>, vector<1x256xf32>
      tpu.vector_store %arg7[%c0_17, %c0_18], %25 {strides = array<i32>} : memref<1x256xf32, #tpu.memory_space<vmem>>, vector<1x256xf32>,
    } else {
    }
    %c0 = arith.constant 0 : index
    %c0_4 = arith.constant 0 : index
    %8 = vector.load %arg4[%c0, %c0_4] : memref<8x256xf32, #tpu.memory_space<vmem>>, vector<8x256xf32>
    %c0_5 = arith.constant 0 : index
    %c0_6 = arith.constant 0 : index
    %9 = vector.load %arg5[%c0_5, %c0_6] : memref<8x256xf32, #tpu.memory_space<vmem>>, vector<8x256xf32>
    %10 = arith.subf %8, %9 : vector<8x256xf32>
    %11 = arith.mulf %10, %10 : vector<8x256xf32>
    %c0_7 = arith.constant 0 : index
    %c0_8 = arith.constant 0 : index
    %12 = vector.load %arg7[%c0_7, %c0_8] : memref<1x256xf32, #tpu.memory_space<vmem>>, vector<1x256xf32>
    %cst = arith.constant dense<0.000000e+00> : vector<256xf32>
    %13 = vector.multi_reduction <add>, %11, %cst [0] : vector<8x256xf32> to vector<256xf32>
    %14 = vector.shape_cast %13 : vector<256xf32> to vector<1x256xf32>
    %15 = arith.addf %12, %14 : vector<1x256xf32>
    %c0_9 = arith.constant 0 : index
    %c0_10 = arith.constant 0 : index
    %16 = vector.load %arg7[%c0_9, %c0_10] : memref<1x256xf32, #tpu.memory_space<vmem>>, vector<1x256xf32>
    tpu.vector_store %arg7[%c0_9, %c0_10], %15 {strides = array<i32>} : memref<1x256xf32, #tpu.memory_space<vmem>>, vector<1x256xf32>,
    %c0_i32_11 = arith.constant 0 : i32
    %17 = arith.cmpi eq, %arg2, %c0_i32_11 : i32
    %18 = arith.extui %17 : i1 to i32
    %c0_i32_12 = arith.constant 0 : i32
    %19 = arith.cmpi ne, %18, %c0_i32_12 : i32
    scf.if %19 {
      %c0_16 = arith.constant 0 : index
      %c0_17 = arith.constant 0 : index
      %25 = vector.load %arg7[%c0_16, %c0_17] : memref<1x256xf32, #tpu.memory_space<vmem>>, vector<1x256xf32>
      %c0_18 = arith.constant 0 : index
      %c0_19 = arith.constant 0 : index
      %26 = vector.load %arg3[%c0_18, %c0_19] : memref<1x256xf32, #tpu.memory_space<vmem>>, vector<1x256xf32>
      %27 = arith.mulf %25, %26 : vector<1x256xf32>
      %c0_20 = arith.constant 0 : index
      %28 = memref.load %arg8[%c0_20] : memref<1xf32, #tpu.memory_space<smem>>
      %29 = vector.shape_cast %27 : vector<1x256xf32> to vector<1x1x256xf32>
      %cst_21 = arith.constant dense<0.000000e+00> : vector<1xf32>
      %30 = vector.multi_reduction <add>, %29, %cst_21 [1, 2] : vector<1x1x256xf32> to vector<1xf32>
      %31 = vector.shape_cast %30 : vector<1xf32> to vector<1x1x1xf32>
      %32 = vector.extract %31[0, 0, 0] : f32 from vector<1x1x1xf32>
      %33 = arith.addf %28, %32 : f32
      %c0_22 = arith.constant 0 : index
      %34 = memref.load %arg8[%c0_22] : memref<1xf32, #tpu.memory_space<smem>>
      memref.store %33, %arg8[%c0_22] : memref<1xf32, #tpu.memory_space<smem>>
    } else {
    }
    %c0_i32_13 = arith.constant 0 : i32
    %20 = arith.cmpi eq, %arg1, %c0_i32_13 : i32
    %c0_i32_14 = arith.constant 0 : i32
    %21 = arith.cmpi eq, %arg2, %c0_i32_14 : i32
    %22 = arith.andi %20, %21 : i1
    %23 = arith.extui %22 : i1 to i32
    %c0_i32_15 = arith.constant 0 : i32
    %24 = arith.cmpi ne, %23, %c0_i32_15 : i32
    scf.if %24 {
      %c0_16 = arith.constant 0 : index
      %25 = memref.load %arg8[%c0_16] : memref<1xf32, #tpu.memory_space<smem>>
      %c0_17 = arith.constant 0 : index
      %c0_18 = arith.constant 0 : index
      %26 = memref.load %arg6[%c0_17, %c0_18] : memref<1x1xf32, #tpu.memory_space<smem>>
      memref.store %25, %arg6[%c0_17, %c0_18] : memref<1x1xf32, #tpu.memory_space<smem>>
    } else {
    }
    return
  }
  func.func @transform_0(%arg0: i32, %arg1: i32, %arg2: i32) -> (i32, i32) {
    %c0_i32 = arith.constant 0 : i32
    %c0_i32_0 = arith.constant 0 : i32
    return %c0_i32, %arg1 : i32, i32
  }
  func.func @transform_1(%arg0: i32, %arg1: i32, %arg2: i32) -> (i32, i32) {
    %c1_i32 = arith.constant 1 : i32
    %0 = arith.muli %arg0, %c1_i32 : i32
    %1 = arith.addi %0, %arg2 : i32
    %c0_i32 = arith.constant 0 : i32
    return %1, %arg1 : i32, i32
  }
  func.func @transform_2(%arg0: i32, %arg1: i32, %arg2: i32) -> (i32, i32) {
    %c1_i32 = arith.constant 1 : i32
    %0 = arith.muli %arg0, %c1_i32 : i32
    %1 = arith.addi %0, %arg2 : i32
    %c0_i32 = arith.constant 0 : i32
    return %1, %arg1 : i32, i32
  }
  func.func @transform_3(%arg0: i32, %arg1: i32, %arg2: i32) -> (i32, i32) {
    %c0_i32 = arith.constant 0 : i32
    %c0_i32_0 = arith.constant 0 : i32
    return %arg0, %c0_i32 : i32, i32
  }
}

</mosaic_0001>

<bundles_post_ra>
// kernel: tpu_custom_call.1
= control target key start
LH: loop header
LB: loop body
LE: loop exit
PB: predicated region body
PF: predicated region fallthrough
CT: control target
= control target key end

     0   :  { %8 = vsyncpa [#allocation5], 0  ;;  %s306_s0 = inlined_call_operand.hbm [shape: f32[1,256], index: 0, kind: input, shape index: {}]   ;;  %s307_s1 = inlined_call_operand.hbm [shape: f32[8,256], index: 1, kind: input, shape index: {}]   ;;  %s308_s2 = inlined_call_operand.hbm [shape: f32[8,256], index: 2, kind: input, shape index: {}]   ;;  %s309_s3 = inlined_call_operand.hbm [shape: f32[1,1], index: 3, kind: output, shape index: {}]  }
   0x1   :  { %9 = vsyncpa [#allocation8], 0  ;;  %s31_s14 = sshll.u32 %s307_s1, 4  ;;  %s32_s14 = int_to_ptr.hbm [resolvable:$true] %s31_s14 }
   0x2   :  { %10 = vsyncpa [#allocation6], 0  ;;  %s261_s15 = smov [#allocation7]   ;;  %s16_s19 = sshll.u32 %s306_s0, 4  ;;  %s17_s19 = int_to_ptr.hbm [resolvable:$true] %s16_s19 }
   0x3   :  { %s33_s16 = sshll.u32 %s261_s15, 4  ;;  %s262_s20 = smov [#allocation4]   ;;  %s34_s16 = int_to_ptr.vmem [resolvable:$true] %s33_s16 }
   0x4   :  { %36 = dma.hbm_to_vmem [thread:$0]  %s32_s14, 256, %s34_s16, [#allocation8]  }
   0x5   :  { %s18_s21 = sshll.u32 %s262_s20, 4  ;;  %s46_s24 = sshll.u32 %s308_s2, 4  ;;  %s19_s21 = int_to_ptr.vmem [resolvable:$true] %s18_s21  ;;  %s47_s24 = int_to_ptr.hbm [resolvable:$true] %s46_s24 }
   0x6   :  { %21 = dma.hbm_to_vmem [thread:$0]  %s17_s19, 32, %s19_s21, [#allocation5]  }
   0x7   :  { %s263_s1 = smov [#allocation9]  }
   0x8   :  { %s48_s25 = sshll.u32 %s263_s1, 4  ;;  %s49_s25 = int_to_ptr.vmem [resolvable:$true] %s48_s25 }
   0x9   :  { %51 = dma.hbm_to_vmem [thread:$0]  %s47_s24, 256, %s49_s25, [#allocation8]  }
   0xa   :  { %255 = dma.done.wait [#allocation5], 32  }
   0xb   :  { %256 = vsyncadd [#allocation5], 4294967264 }
   0xc   :  { %257 = dma.done.wait [#allocation8], 512  }
   0xd   :  { %258 = vsyncadd [#allocation8], 4294966784  ;;  %v77_v0 = vlaneseq  ;;  %v264_v2 = vmov 0.0   ;;  %v82_v3 = vld [vmem:[#allocation7] sm:$0xff]  ;;  %v83_v4 = vld [vmem:[#allocation7 + $0x8] sm:$0xff]  ;;  %vm106_vm1 = vcmask 1040384  }
   0xe   :  { %v84_v5 = vld [vmem:[#allocation9] sm:$0xff]  ;;  %v85_v6 = vld [vmem:[#allocation9 + $0x8] sm:$0xff]  ;;  %s152_s26 = sshll.u32 %s309_s3, 4  ;;  %s265_s28 = smov [#allocation10]   ;;  %s153_s26 = int_to_ptr.hbm [resolvable:$true] %s152_s26 }
   0xf   :  { %vm295_vm0 = vcmp.lt.s32.totalorder %v77_v0, 256  ;;  %v86_v7 = vsub.f32 %v82_v3, %v84_v5  ;;  %v87_v8 = vsub.f32 %v83_v4, %v85_v6  ;;  %v119_v27 = vld [vmem:[#allocation4] sm:$0x3] }
  0x10   :  { %81 = vst.msk [vmem:[#allocation2] sm:$0x3] %vm295_vm0, %v264_v2 }
  0x11   :  { %v88_v9 = vmul.f32 %v86_v7, %v86_v7  ;;  %v89_v10 = vmul.f32 %v87_v8, %v87_v8 }
  0x13   :  { %v91_v11 = vrot.slane %v88_v9, 4  ;;  %v97_v12 = vrot.slane %v89_v10, 4 }
  0x15   :  { %v92_v13 = vadd.f32 %v91_v11, %v88_v9  ;;  %v98_v14 = vadd.f32 %v97_v12, %v89_v10 }
  0x17   :  { %v93_v15 = vrot.slane %v92_v13, 2  ;;  %v99_v16 = vrot.slane %v98_v14, 2  ;;  %v90_v23 = vld [vmem:[#allocation2] sm:$0x3] }
  0x19   :  { %v94_v17 = vadd.f32 %v93_v15, %v92_v13  ;;  %v100_v18 = vadd.f32 %v99_v16, %v98_v14 }
  0x1b   :  { %v95_v19 = vrot.slane %v94_v17, 1  ;;  %v101_v20 = vrot.slane %v100_v18, 1 }
  0x1d   :  { %v96_v21 = vadd.f32 %v95_v19, %v94_v17  ;;  %v102_v22 = vadd.f32 %v101_v20, %v100_v18 }
  0x1f   :  { %v105_v24 = vrot.slane %v102_v22, 7 }
  0x21   :  { %v107_v25 = vsel %vm106_vm1, %v96_v21, %v105_v24 }
  0x22   :  { %v109_v26 = vadd.f32 %v107_v25, %v90_v23 }
  0x24   :  { %114 = vst.msk [vmem:[#allocation2] sm:$0x3] %vm295_vm0, %v109_v26 }
  0x2b   :  { %v118_v28 = vld [vmem:[#allocation2] sm:$0x3] }
  0x2c   :  { %v120_v29 = vmul.f32 %v119_v27, %v118_v28 }
  0x2e   :  { %v123_v30 = vperm.slane %v120_v29, 0  ;;  %v124_v31 = vperm.slane %v120_v29, 1 }
  0x30   :  { %v127_v32 = vsel %vm106_vm1, %v123_v30, 0.0  ;;  %v128_v33 = vsel %vm106_vm1, %v124_v31, 0.0 }
  0x31   :  { %v129_v34 = vadd.f32 %v128_v33, %v127_v32 }
  0x33   :  { %130 = vadd.xlane.f32.xlu0 %v129_v34 }
  0xa6   :  { %v131_v35 = vpop.xlane.xlu0 %130 }
  0xa7   :  { %v132_v36 = vrot.slane %v131_v35, 4 }
  0xa9   :  { %v133_v37 = vadd.f32 %v132_v36, %v131_v35 }
  0xab   :  { %v134_v38 = vrot.slane %v133_v37, 2 }
  0xad   :  { %v135_v39 = vadd.f32 %v134_v38, %v133_v37 }
  0xaf   :  { %v136_v40 = vrot.slane %v135_v39, 1 }
  0xb1   :  { %v137_v41 = vadd.f32 %v136_v40, %v135_v39 }
  0xb3   :  { %164 = vpush %v137_v41 }
  0xe4   :  { %s165_s27 = spop %164 }
  0xe5   :  { %146 = sst [smem:[#allocation10]] %s165_s27 }
  0xe6   :  { %155 = dma.smem_to_hbm %s265_s28, 16, %s153_s26, [#allocation6]  }
  0xe7   :  { %259 = dma.done.wait [#allocation6], 16  }
  0xe8   :  { %260 = vsyncadd [#allocation6], 4294967280 }
  0xe9   :  { %160 = sfence }
  0xea   :  { %161 = vsyncpa [#allocation5], 1 }
  0xeb   :  { %162 = vsyncpa [#allocation8], 1 }
  0xec   :  { %163 = vsyncpa [#allocation6], 1 }

</bundles_post_ra>
